<compile_context>
chip_gen: v5e
topology: v5e:2x2
jax: 0.10.0
libtpu: 0.0.40
codegen_flags: <defaults>
</compile_context>

<pallas_src>
from functools import partial

import jax
import jax.numpy as jnp
import numpy as np
from jax.experimental import pallas as pl
from jax.experimental.pallas import tpu as pltpu

_LANE = 128
_FC_TILE_V = 2048      # lane width of the streamed vocab-projection tiles
_NEG_BIG = -1e30       # attention mask value for padded source positions (no inf-inf NaN)


def _round_up(x, m):
    return (x + m - 1) // m * m


def _s_tile_cap(bp, encp, hp):
    """Largest S tile (multiple of 8, <=512) whose enc + enc_proj blocks stay ~<=8 MiB,
    so the double-buffered attention tiles fit scoped VMEM on every generation."""
    budget = 8 << 20
    return max(8, min(512, (budget // (bp * (encp + hp) * 2)) // 8 * 8))


def _vmem_limit(nbytes):
    """Scoped-VMEM request: double-buffering + headroom, capped below v7x physical."""
    return int(min(48 << 20, max(16 << 20, 2 * nbytes + (4 << 20))))


# ---------------------------------------------------------------------------
# Kernels
# ---------------------------------------------------------------------------
def _enc_proj_kernel(enc_ref, we_ref, b_ref, out_ref):
    """One S-tile of the hoisted encoder-side attention projection: enc @ W_e + b."""
    B, ts, ENCp = enc_ref.shape
    Hp = we_ref.shape[1]
    acc = (jnp.dot(enc_ref[...].reshape(B * ts, ENCp), we_ref[...],
                   preferred_element_type=jnp.float32) + b_ref[...])
    out_ref[...] = acc.reshape(B, ts, Hp).astype(out_ref.dtype)


def _decode_step_kernel(emb_ref, enc_ref, encp_ref, h_ref, c_ref,
                        attn_wh_ref, v_ref,
                        wlin_x_ref, wlin_w_ref, b_lin_ref,
                        wlstm_x_ref, wlstm_h_ref, b_lstm_ref,
                        h_out_ref, c_out_ref,
                        m_sc, l_sc, w_acc, *, s_len, sp):
    """S-tiled additive attention (online softmax) + fused input layer + LSTM cell."""
    f32, bf16 = jnp.float32, jnp.bfloat16
    s_idx = pl.program_id(0)
    n_s = pl.num_programs(0)
    B, ts, ENCp = enc_ref.shape
    Hp = h_ref.shape[1]

    @pl.when(s_idx == 0)
    def _():
        m_sc[...] = jnp.full_like(m_sc, _NEG_BIG)
        l_sc[...] = jnp.zeros_like(l_sc)
        w_acc[...] = jnp.zeros_like(w_acc)

    h = h_ref[...]                                                       # (B, Hp) f32

    # decoder-state attention term (tiny MXU matmul; encoder term hoisted to enc_proj)
    h_term = jnp.dot(h.astype(bf16), attn_wh_ref[...],
                     preferred_element_type=f32)                         # (B, Hp)
    energy = jnp.tanh(encp_ref[...].astype(f32) + h_term[:, None, :])    # (B, ts, Hp)

    # scores via VPU multiply + lane reduce (q=1: avoid degenerate batched MXU matvec)
    scores = jnp.sum(energy * v_ref[...].reshape(1, 1, Hp), axis=-1)     # (B, ts)
    if sp != s_len:  # mask padded source positions (static decision, dynamic tile offset)
        pos = s_idx * ts + jax.lax.broadcasted_iota(jnp.int32, (1, ts), 1)
        scores = jnp.where(pos < s_len, scores, _NEG_BIG)

    # online softmax over source positions
    m_new = jnp.maximum(m_sc[...], jnp.max(scores, axis=-1, keepdims=True))   # (B, 1)
    alpha = jnp.exp(m_sc[...] - m_new)
    p = jnp.exp(scores - m_new)                                               # (B, ts)
    l_sc[...] = alpha * l_sc[...] + jnp.sum(p, axis=-1, keepdims=True)
    w_acc[...] = alpha * w_acc[...] + jnp.sum(
        p[:, :, None] * enc_ref[...].astype(f32), axis=1)                     # (B, ENCp)
    m_sc[...] = m_new

    @pl.when(s_idx == n_s - 1)
    def _():
        # exact normalization (denominator is only (B, 1) elements)
        weighted = w_acc[...] / l_sc[...]                                      # (B, ENCp)

        # fused lstm_input_layer: emb @ W_x + weighted @ W_w + b  (no concatenate)
        lstm_in = (jnp.dot(emb_ref[...], wlin_x_ref[...], preferred_element_type=f32)
                   + jnp.dot(weighted.astype(bf16), wlin_w_ref[...],
                             preferred_element_type=f32)
                   + b_lin_ref[...])                                           # (B, Ep)

        # fused single-step LSTM gates: x @ W_x + h @ W_h + b ; gate order (i, f, g, o)
        gates = (jnp.dot(lstm_in.astype(bf16), wlstm_x_ref[...],
                         preferred_element_type=f32)
                 + jnp.dot(h.astype(bf16), wlstm_h_ref[...],
                           preferred_element_type=f32)
                 + b_lstm_ref[...])                                            # (B, 4*Hp)
        i_g = jax.nn.sigmoid(gates[:, 0:Hp])          # 128-aligned slices: no relayout
        f_g = jax.nn.sigmoid(gates[:, Hp:2 * Hp])
        g_g = jnp.tanh(gates[:, 2 * Hp:3 * Hp])
        o_g = jax.nn.sigmoid(gates[:, 3 * Hp:4 * Hp])
        c_new = f_g * c_ref[...] + i_g * g_g          # padded lanes stay exactly 0
        h_out_ref[...] = o_g * jnp.tanh(c_new)
        c_out_ref[...] = c_new


def _fc_kernel(h_ref, w_ref, b_ref, out_ref):
    """One lane-dense vocab tile of pred = h_new @ fc_w + fc_b (bf16 fc_w streamed)."""
    out_ref[...] = (jnp.dot(h_ref[...].astype(jnp.bfloat16), w_ref[...],
                            preferred_element_type=jnp.float32) + b_ref[...])


# ---------------------------------------------------------------------------
# One-time parameter preparation (transpose + split + pad + bf16 storage)
# ---------------------------------------------------------------------------
def prepare_params(params):
    f32, bf16 = jnp.float32, jnp.bfloat16
    V, E = params["emb_w"].shape
    H = params["attn_b"].shape[0]
    ENC = params["attn_w"].shape[1] - H
    Ep, ENCp, Hp = (_round_up(d, _LANE) for d in (E, ENC, H))
    Vp = _round_up(V, _LANE)
    if Vp > _FC_TILE_V:                 # pad vocab up to a multiple of the fc tile so
        Vp = _round_up(V, _FC_TILE_V)   # the fc stream never degrades to 128-wide tiles

    def pad2(w, r, c, dtype):
        out = jnp.zeros((r, c), f32).at[:w.shape[0], :w.shape[1]].set(w.astype(f32))
        return out.astype(dtype)

    attn_w = params["attn_w"]                        # (H, H+ENC): cat order (hidden, enc)
    attn_wh = pad2(attn_w[:, :H].T, Hp, Hp, bf16)
    attn_we = pad2(attn_w[:, H:].T, ENCp, Hp, bf16)
    attn_b = pad2(params["attn_b"].reshape(1, H), 1, Hp, f32)
    v = pad2(params["v_w"].reshape(1, H), 1, Hp, f32)

    lin_w = params["lin_w"]                          # (E, E+ENC): cat order (emb, weighted)
    w_lin_x = pad2(lin_w[:, :E].T, Ep, Ep, bf16)
    w_lin_w = pad2(lin_w[:, E:].T, ENCp, Ep, bf16)
    b_lin = pad2(params["lin_b"].reshape(1, E), 1, Ep, f32)

    # split LSTM weights; each gate padded to a 128-aligned column slot (order i,f,g,o)
    w_ih_t = params["w_ih"].T                        # (E, 4H)
    w_hh_t = params["w_hh"].T                        # (H, 4H)
    b_sum = (params["b_ih"] + params["b_hh"]).reshape(4, H)
    w_lstm_x = jnp.zeros((Ep, 4 * Hp), f32)
    w_lstm_h = jnp.zeros((Hp, 4 * Hp), f32)
    b_lstm = jnp.zeros((1, 4 * Hp), f32)
    for g in range(4):
        w_lstm_x = w_lstm_x.at[:E, g * Hp:g * Hp + H].set(w_ih_t[:, g * H:(g + 1) * H])
        w_lstm_h = w_lstm_h.at[:H, g * Hp:g * Hp + H].set(w_hh_t[:, g * H:(g + 1) * H])
        b_lstm = b_lstm.at[0, g * Hp:g * Hp + H].set(b_sum[g])

    emb_w = pad2(params["emb_w"], V, Ep, bf16)       # bf16 gather table (rows not padded)
    fc_w = pad2(params["fc_w"].T, Hp, Vp, bf16)      # bf16 (Hp, Vp): the dominant stream
    fc_b = pad2(params["fc_b"].reshape(1, V), 1, Vp, f32)

    return dict(emb_w=emb_w, attn_wh=attn_wh, attn_we=attn_we, attn_b=attn_b, v=v,
                w_lin_x=w_lin_x, w_lin_w=w_lin_w, b_lin=b_lin,
                w_lstm_x=w_lstm_x.astype(bf16), w_lstm_h=w_lstm_h.astype(bf16),
                b_lstm=b_lstm, fc_w=fc_w, fc_b=fc_b)


# ---------------------------------------------------------------------------
# Once-per-sequence encoder preparation (hoisted out of the per-token step)
# ---------------------------------------------------------------------------
@jax.jit
def prepare_encoder(encoder_out, w):
    S, B, ENC = encoder_out.shape
    ENCp, Hp = w["attn_we"].shape
    Bp = _round_up(B, 8)
    tile_s = min(_s_tile_cap(Bp, ENCp, Hp), _round_up(S, 8))
    Sp = _round_up(S, tile_s)

    enc = jnp.zeros((Bp, Sp, ENCp), jnp.bfloat16)
    enc = enc.at[:B, :S, :ENC].set(
        jnp.transpose(encoder_out, (1, 0, 2)).astype(jnp.bfloat16))

    vmem = _vmem_limit(2 * Bp * tile_s * (ENCp + Hp) * 2 + ENCp * Hp * 2 + Hp * 4)
    enc_proj = pl.pallas_call(
        _enc_proj_kernel,
        out_shape=jax.ShapeDtypeStruct((Bp, Sp, Hp), jnp.bfloat16),
        grid=(Sp // tile_s,),
        in_specs=[pl.BlockSpec((Bp, tile_s, ENCp), lambda s: (0, s, 0)),
                  pl.BlockSpec((ENCp, Hp), lambda s: (0, 0)),
                  pl.BlockSpec((1, Hp), lambda s: (0, 0))],
        out_specs=pl.BlockSpec((Bp, tile_s, Hp), lambda s: (0, s, 0)),
        compiler_params=pltpu.CompilerParams(
            dimension_semantics=("parallel",), vmem_limit_bytes=vmem),
    )(enc, w["attn_we"], w["attn_b"])
    return enc, enc_proj


# ---------------------------------------------------------------------------
# Per-token decode step
# ---------------------------------------------------------------------------
@partial(jax.jit, static_argnames=("out_dim", "src_len"))
def decode_step(dec_src, enc, enc_proj, hidden, cell, w, *, out_dim, src_len):
    f32 = jnp.float32
    Bp, Sp, ENCp = enc.shape
    B, H = hidden.shape[1], hidden.shape[2]
    Hp = w["attn_wh"].shape[0]
    Ep = w["b_lin"].shape[1]
    Vp = w["fc_w"].shape[1]
    tile_s = min(_s_tile_cap(Bp, ENCp, Hp), Sp)      # identical choice to prepare_encoder

    # embedding lookup: real gather straight into a padded-batch bf16 activation
    idx = jnp.zeros((Bp,), jnp.int32).at[:B].set(dec_src.astype(jnp.int32))
    emb = jnp.take(w["emb_w"], idx, axis=0)                              # (Bp, Ep) bf16
    h0 = jnp.zeros((Bp, Hp), f32).at[:B, :H].set(hidden[0].astype(f32))
    c0 = jnp.zeros((Bp, Hp), f32).at[:B, :H].set(cell[0].astype(f32))

    full = lambda shape: pl.BlockSpec(shape, lambda s: (0, 0))
    step_vmem = _vmem_limit(
        2 * Bp * tile_s * (ENCp + Hp) * 2
        + Bp * Ep * 2 + 4 * Bp * Hp * 4
        + (Hp * Hp + Ep * Ep + ENCp * Ep + (Ep + Hp) * 4 * Hp) * 2
        + (2 * Hp + Ep + 4 * Hp) * 4 + Bp * (2 + ENCp) * 4)
    h_new, c_new = pl.pallas_call(
        partial(_decode_step_kernel, s_len=src_len, sp=Sp),
        out_shape=(jax.ShapeDtypeStruct((Bp, Hp), f32),
                   jax.ShapeDtypeStruct((Bp, Hp), f32)),
        grid=(Sp // tile_s,),
        in_specs=[full((Bp, Ep)),
                  pl.BlockSpec((Bp, tile_s, ENCp), lambda s: (0, s, 0)),
                  pl.BlockSpec((Bp, tile_s, Hp), lambda s: (0, s, 0)),
                  full((Bp, Hp)), full((Bp, Hp)),
                  full((Hp, Hp)), full((1, Hp)),
                  full((Ep, Ep)), full((ENCp, Ep)), full((1, Ep)),
                  full((Ep, 4 * Hp)), full((Hp, 4 * Hp)), full((1, 4 * Hp))],
        out_specs=(full((Bp, Hp)), full((Bp, Hp))),
        scratch_shapes=[pltpu.VMEM((Bp, 1), f32),        # running max
                        pltpu.VMEM((Bp, 1), f32),        # running denominator
                        pltpu.VMEM((Bp, ENCp), f32)],    # running weighted-sum
        compiler_params=pltpu.CompilerParams(
            dimension_semantics=("arbitrary",), vmem_limit_bytes=step_vmem),
    )(emb, enc, enc_proj, h0, c0,
      w["attn_wh"], w["v"], w["w_lin_x"], w["w_lin_w"], w["b_lin"],
      w["w_lstm_x"], w["w_lstm_h"], w["b_lstm"])

    # vocab projection: fc_w streamed per lane-dense 2048-wide bf16 tile over a parallel grid
    tile_v = _FC_TILE_V if (Vp >= _FC_TILE_V and Vp % _FC_TILE_V == 0) else Vp
    assert Vp % tile_v == 0
    fc_vmem = _vmem_limit(Bp * Hp * 4 + 2 * (Hp * tile_v * 2 + tile_v * 4 + Bp * tile_v * 4))
    pred = pl.pallas_call(
        _fc_kernel,
        out_shape=jax.ShapeDtypeStruct((Bp, Vp), f32),
        grid=(Vp // tile_v,),
        in_specs=[pl.BlockSpec((Bp, Hp), lambda j: (0, 0)),
                  pl.BlockSpec((Hp, tile_v), lambda j: (0, j)),
                  pl.BlockSpec((1, tile_v), lambda j: (0, j))],
        out_specs=pl.BlockSpec((Bp, tile_v), lambda j: (0, j)),
        compiler_params=pltpu.CompilerParams(
            dimension_semantics=("parallel",), vmem_limit_bytes=fc_vmem),
    )(h_new, w["fc_w"], w["fc_b"])

    # match PyTorch return shapes: predictions (B, V), hidden/cell (1, B, H)
    return (pred[:B, :out_dim],
            h_new[:B, :H][None],
            c_new[:B, :H][None])


# ---------------------------------------------------------------------------
# Parameter init + pure-JAX reference (mirror of the PyTorch forward, f32)
# ---------------------------------------------------------------------------
def init_params(key, E, ENC, H, V):
    ks = jax.random.split(key, 11)
    u = lambda k, shape, s=0.1: jax.random.uniform(k, shape, jnp.float32, -s, s)
    return dict(
        emb_w=u(ks[0], (V, E)),             # nn.Embedding(output_dim, embed_dim)
        attn_w=u(ks[1], (H, H + ENC)),      # nn.Linear(enc + hid, hid)
        attn_b=u(ks[2], (H,)),
        v_w=u(ks[3], (1, H)),               # nn.Linear(hid, 1, bias=False)
        lin_w=u(ks[4], (E, E + ENC)),       # nn.Linear(embed + enc, embed)
        lin_b=u(ks[5], (E,)),
        w_ih=u(ks[6], (4 * H, E)),          # LSTM weight_ih_l0
        w_hh=u(ks[7], (4 * H, H)),          # LSTM weight_hh_l0
        b_ih=u(ks[8], (4 * H,)),
        b_hh=u(ks[9], (4 * H,)),
        fc_w=u(ks[10], (V, H)),             # fc.weight ~ U(-0.1, 0.1)
        fc_b=jnp.zeros((V,), jnp.float32),  # fc.bias = 0 (init_weights)
    )


def reference_forward(dec_src, encoder_out, hidden, cell, params):
    S, B, ENC = encoder_out.shape
    H = hidden.shape[-1]
    emb = params["emb_w"][dec_src.astype(jnp.int32)]                    # (B, E)
    h_rep = jnp.broadcast_to(hidden[0][:, None, :], (B, S, H))
    enc_b = jnp.transpose(encoder_out, (1, 0, 2))                       # (B, S, ENC)
    cat = jnp.concatenate([h_rep, enc_b], axis=2)
    energy = jnp.tanh(cat @ params["attn_w"].T + params["attn_b"])
    attn_scores = (energy @ params["v_w"].T)[..., 0]                    # (B, S)
    a = jax.nn.softmax(attn_scores, axis=1)
    weighted = jnp.einsum("bs,bse->be", a, enc_b)                       # (B, ENC)
    lstm_in = jnp.concatenate([emb, weighted], axis=1) @ params["lin_w"].T + params["lin_b"]
    gates = (lstm_in @ params["w_ih"].T + params["b_ih"]
             + hidden[0] @ params["w_hh"].T + params["b_hh"])
    i_g = jax.nn.sigmoid(gates[:, 0:H])
    f_g = jax.nn.sigmoid(gates[:, H:2 * H])
    g_g = jnp.tanh(gates[:, 2 * H:3 * H])
    o_g = jax.nn.sigmoid(gates[:, 3 * H:4 * H])
    c_new = f_g * cell[0] + i_g * g_g
    h_new = o_g * jnp.tanh(c_new)
    pred = h_new @ params["fc_w"].T + params["fc_b"]
    return pred, h_new[None], c_new[None]


if __name__ == "__main__":
    # small shapes: batch=8, src_len=13 (exercises the padded-S mask path),
    # encoder_dim=32, embed_dim=32, hid_dim=32, output_dim(vocab)=64, n_layers=1
    B, S, ENC, E, H, V = 8, 13, 32, 32, 32, 64
    key = jax.random.PRNGKey(0)
    k_p, k_src, k_enc, k_h, k_c = jax.random.split(key, 5)

    params = init_params(k_p, E, ENC, H, V)
    dec_src = jax.random.randint(k_src, (B,), 0, V, dtype=jnp.int32)
    encoder_out = jax.random.normal(k_enc, (S, B, ENC), jnp.float32)
    hidden = jax.random.normal(k_h, (1, B, H), jnp.float32)
    cell = jax.random.normal(k_c, (1, B, H), jnp.float32)

    w = prepare_params(params)                        # once per model load
    enc, enc_proj = prepare_encoder(encoder_out, w)   # once per source sequence
    pred, h_new, c_new = decode_step(dec_src, enc, enc_proj, hidden, cell, w,
                                     out_dim=V, src_len=S)
    jax.block_until_ready((pred, h_new, c_new))

    pred_r, h_r, c_r = reference_forward(dec_src, encoder_out, hidden, cell, params)
    # tolerance reflects bf16 storage of the streamed operands (enc, enc_proj, weights)
    # with f32 accumulation; the f32 reference is the exact-math baseline.
    np.testing.assert_allclose(np.asarray(pred), np.asarray(pred_r), rtol=2e-2, atol=2e-2)
    np.testing.assert_allclose(np.asarray(h_new), np.asarray(h_r), rtol=2e-2, atol=2e-2)
    np.testing.assert_allclose(np.asarray(c_new), np.asarray(c_r), rtol=2e-2, atol=2e-2)

    print("KERNEL_OK")
</pallas_src>

<mosaic_0001>
module attributes {stable_mosaic.version = 11 : i64} {
  func.func @_enc_proj_kernel(%arg0: i32, %arg1: memref<8x16x128xbf16, #tpu.memory_space<vmem>>, %arg2: memref<128x128xbf16, #tpu.memory_space<vmem>>, %arg3: memref<1x128xf32, #tpu.memory_space<vmem>>, %arg4: memref<8x16x128xbf16, #tpu.memory_space<vmem>>) attributes {dimension_semantics = [#tpu.dimension_semantics<parallel>], iteration_bounds = array<i64: 1>, scalar_prefetch = 0 : i64, scratch_operands = 0 : i64, tpu.core_type = #tpu.core_type<tc>, window_params = [{transform_indices = @transform_0, window_bounds = array<i64: 8, 16, 128>}, {pipeline_mode = #tpu.pipeline_mode<synchronous>, transform_indices = @transform_1, window_bounds = array<i64: 128, 128>}, {pipeline_mode = #tpu.pipeline_mode<synchronous>, transform_indices = @transform_2, window_bounds = array<i64: 1, 128>}, {transform_indices = @transform_3, window_bounds = array<i64: 8, 16, 128>}]} {
    %c0 = arith.constant 0 : index
    %c0_0 = arith.constant 0 : index
    %c0_1 = arith.constant 0 : index
    %0 = vector.load %arg1[%c0, %c0_0, %c0_1] : memref<8x16x128xbf16, #tpu.memory_space<vmem>>, vector<8x16x128xbf16>
    %1 = vector.shape_cast %0 : vector<8x16x128xbf16> to vector<128x128xbf16>
    %c0_2 = arith.constant 0 : index
    %c0_3 = arith.constant 0 : index
    %2 = vector.load %arg2[%c0_2, %c0_3] : memref<128x128xbf16, #tpu.memory_space<vmem>>, vector<128x128xbf16>
    %cst = arith.constant dense<0.000000e+00> : vector<128x128xf32>
    %3 = tpu.matmul %1, %2, %cst {dimension_numbers = #tpu.dot_dimension_numbers<[1], [0], [0], [1], [0, 0, 1, 1], [], []>} : vector<128x128xbf16>, vector<128x128xbf16>, vector<128x128xf32> -> vector<128x128xf32>
    %c0_4 = arith.constant 0 : index
    %c0_5 = arith.constant 0 : index
    %4 = vector.load %arg3[%c0_4, %c0_5] : memref<1x128xf32, #tpu.memory_space<vmem>>, vector<1x128xf32>
    %5 = vector.broadcast %4 : vector<1x128xf32> to vector<128x128xf32>
    %6 = arith.addf %3, %5 : vector<128x128xf32>
    %7 = vector.shape_cast %6 : vector<128x128xf32> to vector<8x16x128xf32>
    %8 = arith.truncf %7 : vector<8x16x128xf32> to vector<8x16x128xbf16>
    %c0_6 = arith.constant 0 : index
    %c0_7 = arith.constant 0 : index
    %c0_8 = arith.constant 0 : index
    %9 = vector.load %arg4[%c0_6, %c0_7, %c0_8] : memref<8x16x128xbf16, #tpu.memory_space<vmem>>, vector<8x16x128xbf16>
    tpu.vector_store %arg4[%c0_6, %c0_7, %c0_8], %8 {strides = array<i32>} : memref<8x16x128xbf16, #tpu.memory_space<vmem>>, vector<8x16x128xbf16>,
    return
  }
  func.func @transform_0(%arg0: i32) -> (i32, i32, i32) {
    %c0_i32 = arith.constant 0 : i32
    %c0_i32_0 = arith.constant 0 : i32
    %c0_i32_1 = arith.constant 0 : i32
    return %c0_i32, %arg0, %c0_i32_0 : i32, i32, i32
  }
  func.func @transform_1(%arg0: i32) -> (i32, i32) {
    %c0_i32 = arith.constant 0 : i32
    %c0_i32_0 = arith.constant 0 : i32
    %c0_i32_1 = arith.constant 0 : i32
    return %c0_i32, %c0_i32_0 : i32, i32
  }
  func.func @transform_2(%arg0: i32) -> (i32, i32) {
    %c0_i32 = arith.constant 0 : i32
    %c0_i32_0 = arith.constant 0 : i32
    %c0_i32_1 = arith.constant 0 : i32
    return %c0_i32, %c0_i32_0 : i32, i32
  }
  func.func @transform_3(%arg0: i32) -> (i32, i32, i32) {
    %c0_i32 = arith.constant 0 : i32
    %c0_i32_0 = arith.constant 0 : i32
    %c0_i32_1 = arith.constant 0 : i32
    return %c0_i32, %arg0, %c0_i32_0 : i32, i32, i32
  }
}

</mosaic_0001>

<bundles_post_ra>
// kernel: prepare_encoder.1
= control target key start
LH: loop header
LB: loop body
LE: loop exit
PB: predicated region body
PF: predicated region fallthrough
CT: control target
= control target key end

     0   :  { %s504_s0 = inlined_call_operand.vmem [shape: bf16[8,16,128], index: 0, kind: input, shape index: {}]   ;;  %s505_s1 = inlined_call_operand.vmem [shape: bf16[128,128], index: 1, kind: input, shape index: {}]   ;;  %s506_s2 = inlined_call_operand.vmem [shape: f32[1,128], index: 2, kind: input, shape index: {}]   ;;  %s507_s3 = inlined_call_operand.hbm [shape: bf16[8,16,128], index: 3, kind: output, shape index: {}]  }
   0x1   :  { %v325_v0 = vld [vmem:[%s505_s1 + $0x38] sm:$0xff]  ;;  %v324_v1 = vld [vmem:[%s505_s1 + $0x30] sm:$0xff] }
   0x2   :  { %147 = vmatpush.bf16.msra.mxu0 %v325_v0  ;;  %373 = vmatpush.bf16.msra.mxu1 %v325_v0 }
   0x3   :  { %374 = vmatpush.bf16.msra.mxu2 %v325_v0  ;;  %375 = vmatpush.bf16.msra.mxu3 %v325_v0 }
   0x4   :  { %8 = vsyncpa [#allocation3], 0  ;;  %v323_v2 = vld [vmem:[%s505_s1 + $0x28] sm:$0xff]  ;;  %v322_v3 = vld [vmem:[%s505_s1 + $0x20] sm:$0xff]  ;;  %s234_s20 = sshll.u32 %s507_s3, 4  ;;  %s428_s21 = smov 64   ;;  %s235_s20 = int_to_ptr.hbm [resolvable:$true] %s234_s20 }
   0x5   :  { %v321_v4 = vld [vmem:[%s505_s1 + $0x18] sm:$0xff]  ;;  %v320_v5 = vld [vmem:[%s505_s1 + $0x10] sm:$0xff]  ;;  %v319_v6 = vld [vmem:[%s505_s1 + $0x8] sm:$0xff]  ;;  %s429_s22 = smov 4  }
   0x6   :  { %148 = vmatpush.bf16.msra.mxu0 %v324_v1  ;;  %376 = vmatpush.bf16.msra.mxu1 %v324_v1  ;;  %v318_v7 = vld [vmem:[%s505_s1] sm:$0xff]  ;;  %v312_v9 = vld [vmem:[%s504_s0 + $0x10] sm:$0xff]  ;;  %v311_v12 = vld [vmem:[%s504_s0 + $0x8] sm:$0xff] }
   0x7   :  { %377 = vmatpush.bf16.msra.mxu2 %v324_v1  ;;  %378 = vmatpush.bf16.msra.mxu3 %v324_v1  ;;  %v310_v8 = vld [vmem:[%s504_s0] sm:$0xff]  ;;  %v316_v11 = vld [vmem:[%s504_s0 + $0x30] sm:$0xff]  ;;  %v313_v13 = vld [vmem:[%s504_s0 + $0x18] sm:$0xff] }
   0x8   :  { %v314_v10 = vld [vmem:[%s504_s0 + $0x20] sm:$0xff]  ;;  %v315_v14 = vld [vmem:[%s504_s0 + $0x28] sm:$0xff]  ;;  %v317_v15 = vld [vmem:[%s504_s0 + $0x38] sm:$0xff]  ;;  %s427_s0 = smov [#allocation2]  }
   0x9   :  { %v400_v18 = vld [vmem:[%s506_s2] ss:$0 sm:$0xff]  ;;  %s232_s2 = sshll.u32 %s427_s0, 4  ;;  %s233_s2 = int_to_ptr.vmem [resolvable:$true] %s232_s2 }
   0xa   :  { %149 = vmatpush.bf16.msra.mxu0 %v323_v2  ;;  %379 = vmatpush.bf16.msra.mxu1 %v323_v2 }
   0xb   :  { %380 = vmatpush.bf16.msra.mxu2 %v323_v2  ;;  %381 = vmatpush.bf16.msra.mxu3 %v323_v2 }
   0xe   :  { %150 = vmatpush.bf16.msra.mxu0 %v322_v3  ;;  %382 = vmatpush.bf16.msra.mxu1 %v322_v3 }
   0xf   :  { %383 = vmatpush.bf16.msra.mxu2 %v322_v3  ;;  %384 = vmatpush.bf16.msra.mxu3 %v322_v3 }
  0x12   :  { %151 = vmatpush.bf16.msra.mxu0 %v321_v4  ;;  %385 = vmatpush.bf16.msra.mxu1 %v321_v4 }
  0x13   :  { %386 = vmatpush.bf16.msra.mxu2 %v321_v4  ;;  %387 = vmatpush.bf16.msra.mxu3 %v321_v4 }
  0x16   :  { %152 = vmatpush.bf16.msra.mxu0 %v320_v5  ;;  %388 = vmatpush.bf16.msra.mxu1 %v320_v5 }
  0x17   :  { %389 = vmatpush.bf16.msra.mxu2 %v320_v5  ;;  %390 = vmatpush.bf16.msra.mxu3 %v320_v5 }
  0x1a   :  { %153 = vmatpush.bf16.msra.mxu0 %v319_v6  ;;  %391 = vmatpush.bf16.msra.mxu1 %v319_v6 }
  0x1b   :  { %392 = vmatpush.bf16.msra.mxu2 %v319_v6  ;;  %393 = vmatpush.bf16.msra.mxu3 %v319_v6 }
  0x1e   :  { %154 = vmatpush.bf16.msra.mxu0 %v318_v7  ;;  %394 = vmatpush.bf16.msra.mxu1 %v318_v7 }
  0x1f   :  { %395 = vmatpush.bf16.msra.mxu2 %v318_v7  ;;  %396 = vmatpush.bf16.msra.mxu3 %v318_v7 }
  0x21   :  { %155 = vmatmul.bf16.vlgmr.msra.gmra.mxu0 %v310_v8  ;;  %165 = vmatmul.bf16.vlgmr.msra.gmra.mxu1 %v312_v9 }
  0x22   :  { %175 = vmatmul.bf16.vlgmr.msra.gmra.mxu2 %v314_v10  ;;  %185 = vmatmul.bf16.vlgmr.msra.gmra.mxu3 %v316_v11 }
  0x31   :  { %160 = vmatmul.bf16.gmra.mxu0 %v311_v12  ;;  %170 = vmatmul.bf16.gmra.mxu1 %v313_v13 }
  0x32   :  { %180 = vmatmul.bf16.gmra.mxu2 %v315_v14  ;;  %190 = vmatmul.bf16.gmra.mxu3 %v317_v15 }
  0x9e   :  { %v156_v16 = vpop.f32.mrf.mxu0  ;;  %v166_v17 = vpop.f32.mrf.mxu1 }
  0x9f   :  { %v157_v23 = vadd.f32 %v400_v18, %v156_v16  ;;  %v167_v24 = vadd.f32 %v400_v18, %v166_v17 }
  0xa5   :  { %v176_v19 = vpop.f32.mrf.mxu2  ;;  %v186_v20 = vpop.f32.mrf.mxu3 }
  0xa6   :  { %v158_v21 = vpop.f32.mrf.mxu0  ;;  %v168_v22 = vpop.f32.mrf.mxu1  ;;  %v177_v31 = vadd.f32 %v400_v18, %v176_v19  ;;  %v187_v32 = vadd.f32 %v400_v18, %v186_v20 }
  0xa7   :  { %v159_v25 = vadd.f32 %v400_v18, %v158_v21  ;;  %v169_v26 = vadd.f32 %v400_v18, %v168_v22 }
  0xa9   :  { %v329_v27 = vpack.c.bf16 %v159_v25, %v157_v23  ;;  %v339_v28 = vpack.c.bf16 %v169_v26, %v167_v24 }
  0xab   :  { %330 = vst [vmem:[#allocation2] sm:$0xff] %v329_v27  }
  0xac   :  { %367 = vst [vmem:[#allocation2 + $0x10] sm:$0xff] %v339_v28  }
  0xad   :  { %v178_v29 = vpop.f32.mrf.mxu2  ;;  %v188_v30 = vpop.f32.mrf.mxu3 }
  0xae   :  { %v179_v33 = vadd.f32 %v400_v18, %v178_v29  ;;  %v189_v34 = vadd.f32 %v400_v18, %v188_v30  ;;  %v161_v35 = vpop.f32.mrf.mxu0  ;;  %v171_v36 = vpop.f32.mrf.mxu1 }
  0xaf   :  { %v162_v43 = vadd.f32 %v400_v18, %v161_v35  ;;  %v172_v44 = vadd.f32 %v400_v18, %v171_v36 }
  0xb0   :  { %v349_v37 = vpack.c.bf16 %v179_v33, %v177_v31  ;;  %v359_v38 = vpack.c.bf16 %v189_v34, %v187_v32 }
  0xb2   :  { %369 = vst [vmem:[#allocation2 + $0x20] sm:$0xff] %v349_v37  }
  0xb3   :  { %371 = vst [vmem:[#allocation2 + $0x30] sm:$0xff] %v359_v38  }
  0xb5   :  { %v181_v39 = vpop.f32.mrf.mxu2  ;;  %v191_v40 = vpop.f32.mrf.mxu3 }
  0xb6   :  { %v163_v41 = vpop.f32.mrf.mxu0  ;;  %v173_v42 = vpop.f32.mrf.mxu1  ;;  %v182_v51 = vadd.f32 %v400_v18, %v181_v39  ;;  %v192_v52 = vadd.f32 %v400_v18, %v191_v40 }
  0xb7   :  { %v164_v45 = vadd.f32 %v400_v18, %v163_v41  ;;  %v174_v46 = vadd.f32 %v400_v18, %v173_v42 }
  0xb9   :  { %v334_v47 = vpack.c.bf16 %v164_v45, %v162_v43  ;;  %v344_v48 = vpack.c.bf16 %v174_v46, %v172_v44 }
  0xbb   :  { %366 = vst [vmem:[#allocation2 + $0x8] sm:$0xff] %v334_v47  }
  0xbc   :  { %368 = vst [vmem:[#allocation2 + $0x18] sm:$0xff] %v344_v48  }
  0xbd   :  { %v183_v49 = vpop.f32.mrf.mxu2  ;;  %v193_v50 = vpop.f32.mrf.mxu3 }
  0xbe   :  { %v184_v53 = vadd.f32 %v400_v18, %v183_v49  ;;  %v194_v54 = vadd.f32 %v400_v18, %v193_v50 }
  0xc0   :  { %v354_v55 = vpack.c.bf16 %v184_v53, %v182_v51  ;;  %v364_v56 = vpack.c.bf16 %v194_v54, %v192_v52 }
  0xc2   :  { %370 = vst [vmem:[#allocation2 + $0x28] sm:$0xff] %v354_v55  }
  0xc3   :  { %372 = vst [vmem:[#allocation2 + $0x38] sm:$0xff] %v364_v56  }
  0xc4   :  { %240 = dma.vmem_to_hbm [thread:$0]  %s233_s2, 1024, %s235_s20, [#allocation3], %s428_s21, %s428_s21, %s429_s22  }
  0xc5   :  { %425 = dma.done.wait [#allocation3], 1024  }
  0xc6   :  { %426 = vsyncadd [#allocation3], 4294966272 }
  0xc7   :  { %245 = vsyncpa [#allocation3], 1 }

</bundles_post_ra>
